<compile_context>
chip_gen: v7x
topology: tpu7x:2x2x1
jax: 0.10.0
libtpu: 0.0.40
codegen_flags: <defaults>
</compile_context>

<pallas_src>
import functools

import jax
import jax.numpy as jnp
import numpy as np
from jax.experimental import pallas as pl
from jax.experimental.pallas import tpu as pltpu


def _ccb_loss_kernel(qids_ref, cb_qids_ref, q_ref, dt_ref, out_ref,
                     m_sc, l_sc, s_sc, c_sc, *,
                     inv_temperature: float, threshold: float):
    """Online soft-label cross-entropy over streamed doc tiles.

    Scratch (all (bt, 1) f32, resident across the N-reduction axis):
      m_sc: running row max              l_sc: running sum(exp(scores' - m))
      s_sc: running sum(mask * scores')  c_sc: running match counts
    Finalize: per_row = (m + log l) - s / max(c, 1)
    """
    k = pl.program_id(1)

    @pl.when(k == 0)
    def _():
        m_sc[...] = jnp.full_like(m_sc, -jnp.inf)
        l_sc[...] = jnp.zeros_like(l_sc)
        s_sc[...] = jnp.zeros_like(s_sc)
        c_sc[...] = jnp.zeros_like(c_sc)

    # Soft-label mask for this (B-tile, N-tile): broadcasted int equality -> 0/1 f32.
    mask = (qids_ref[...] == cb_qids_ref[...]).astype(jnp.float32)      # (bt, nt)

    # MXU matmul in the native input dtype with f32 accumulation.  RHS is the
    # pre-transposed (D, N) doc matrix, so this is a plain [M,K]@[K,N] contraction.
    raw = jax.lax.dot_general(
        q_ref[...], dt_ref[...],
        dimension_numbers=(((1,), (0,)), ((), ())),
        preferred_element_type=jnp.float32,
    )                                                                   # (bt, nt) f32

    # scores' = scores / temperature - threshold on matched entries (mask is 0/1).
    scores = raw * inv_temperature - threshold * mask

    # Online log-softmax statistics (flash-style rescale of the running sum-exp).
    tile_max = jnp.max(scores, axis=-1, keepdims=True)                  # (bt, 1)
    m_prev = m_sc[...]
    m_new = jnp.maximum(m_prev, tile_max)
    alpha = jnp.exp(m_prev - m_new)
    l_sc[...] = alpha * l_sc[...] + jnp.sum(jnp.exp(scores - m_new),
                                            axis=-1, keepdims=True)
    m_sc[...] = m_new

    # Soft-label numerator pieces (labels = mask / counts, applied at finalize).
    s_sc[...] = s_sc[...] + jnp.sum(mask * scores, axis=-1, keepdims=True)
    c_sc[...] = c_sc[...] + jnp.sum(mask, axis=-1, keepdims=True)

    @pl.when(k == pl.num_programs(1) - 1)
    def _():
        lse = m_sc[...] + jnp.log(l_sc[...])
        counts = jnp.maximum(c_sc[...], 1.0)   # guard rows with zero matches (NaN guard)
        out_ref[...] = lse - s_sc[...] / counts


def _choose_tile(total: int, max_tile: int, align: int) -> int:
    """Largest `align`-multiple divisor of `total` that is <= max_tile; falls back to
    the full extent (a full-extent block is always a legal BlockSpec)."""
    if total <= max_tile:
        return total
    t = max_tile - (max_tile % align)
    while t >= align:
        if total % t == 0:
            return t
        t -= align
    return total


def contrastive_cross_batch_loss(qids, cb_qids, query_embeddings, doc_embeddings,
                                 *, temperature: float, threshold: float,
                                 b_tile: int = 128, n_tile: int = 512):
    B, D = query_embeddings.shape
    N = doc_embeddings.shape[0]

    qids2 = qids.reshape(B, 1).astype(jnp.int32)
    cb2 = cb_qids.reshape(1, N).astype(jnp.int32)
    # One-time XLA transpose outside the kernel: RHS tiles become [K, N_tile].
    dt = doc_embeddings.T                                               # (D, N)

    bt = _choose_tile(B, b_tile, 8)       # sublane-aligned B tile
    nt = _choose_tile(N, n_tile, 128)     # lane-aligned N tile (reduction axis)
    grid = (B // bt, N // nt)

    kernel = functools.partial(_ccb_loss_kernel,
                               inv_temperature=1.0 / float(temperature),
                               threshold=float(threshold))

    itemsize = jnp.dtype(query_embeddings.dtype).itemsize
    cost = pl.CostEstimate(
        flops=2 * B * N * D,
        transcendentals=B * N,
        bytes_accessed=(B * D + D * N * (B // bt)) * itemsize + (B + N) * 4 + B * 4,
    )

    row_losses = pl.pallas_call(
        kernel,
        out_shape=jax.ShapeDtypeStruct((B, 1), jnp.float32),
        grid_spec=pltpu.PrefetchScalarGridSpec(
            num_scalar_prefetch=0,
            grid=grid,
            in_specs=[
                pl.BlockSpec((bt, 1), lambda i, k: (i, 0)),   # qids     (B, 1)
                pl.BlockSpec((1, nt), lambda i, k: (0, k)),   # cb_qids  (1, N)
                pl.BlockSpec((bt, D), lambda i, k: (i, 0)),   # Q        (B, D), resident per i
                pl.BlockSpec((D, nt), lambda i, k: (0, k)),   # D^T      (D, N), streamed
            ],
            out_specs=pl.BlockSpec((bt, 1), lambda i, k: (i, 0)),
            scratch_shapes=[pltpu.VMEM((bt, 1), jnp.float32)] * 4,      # m, l, s, c
        ),
        compiler_params=pltpu.CompilerParams(
            dimension_semantics=("parallel", "arbitrary"),
            vmem_limit_bytes=48 * 1024 * 1024,
        ),
        cost_estimate=cost,
    )(qids2, cb2, query_embeddings, dt)

    # Tiny (B, 1) mean: cheaper as one XLA reduce than a cross-tile scalar accumulator,
    # and it keeps the B grid axis fully parallel (megacore on v7x).
    return jnp.mean(row_losses)


def _reference(qids, cb_qids, q, d, temperature, threshold):
    mask = (qids[:, None] == cb_qids[None, :]).astype(jnp.float32)
    labels = mask / jnp.sum(mask, axis=-1, keepdims=True)
    scores = jnp.dot(q, d.T, preferred_element_type=jnp.float32) / temperature
    scores = jnp.where(labels > 0, scores - threshold, scores)
    logp = jax.nn.log_softmax(scores, axis=-1)
    return jnp.mean(-jnp.sum(labels * logp, axis=-1))


if __name__ == "__main__":
    # Config (DictConfig stand-in).
    temperature = 0.05
    threshold = 0.1

    # Small but grid-exercising shapes: with (bt=8, nt=128) this is a 2 x 2 grid.
    B, N, D = 16, 256, 128
    NUM_Q = 8

    key = jax.random.PRNGKey(0)
    kq, kd = jax.random.split(key)
    q = jax.random.normal(kq, (B, D), dtype=jnp.float32)
    d = jax.random.normal(kd, (N, D), dtype=jnp.float32)
    # L2-normalize (typical retrieval embeddings; keeps logits well-conditioned).
    q = q / jnp.linalg.norm(q, axis=-1, keepdims=True)
    d = d / jnp.linalg.norm(d, axis=-1, keepdims=True)
    # Deterministic ids: every query id appears N // NUM_Q times in the cross batch.
    qids = jnp.arange(B, dtype=jnp.int32) % NUM_Q
    cb_qids = jnp.arange(N, dtype=jnp.int32) % NUM_Q

    run = functools.partial(contrastive_cross_batch_loss,
                            temperature=temperature, threshold=threshold,
                            b_tile=8, n_tile=128)

    # f32 path.
    loss32 = jax.block_until_ready(run(qids, cb_qids, q, d))
    ref32 = _reference(qids, cb_qids, q, d, temperature, threshold)
    np.testing.assert_allclose(np.asarray(loss32), np.asarray(ref32),
                               rtol=1e-4, atol=1e-4)

    # bf16 path (bf16 MXU inputs, f32 accumulation and softmax math).
    q16, d16 = q.astype(jnp.bfloat16), d.astype(jnp.bfloat16)
    loss16 = jax.block_until_ready(run(qids, cb_qids, q16, d16))
    ref16 = _reference(qids, cb_qids, q16, d16, temperature, threshold)
    np.testing.assert_allclose(np.asarray(loss16), np.asarray(ref16),
                               rtol=2e-2, atol=2e-2)

    print("KERNEL_OK")
</pallas_src>

<mosaic_0001>
module attributes {stable_mosaic.version = 11 : i64} {
  func.func @_ccb_loss_kernel(%arg0: i32, %arg1: i32, %arg2: memref<8x1xi32, #tpu.memory_space<vmem>>, %arg3: memref<1x128xi32, #tpu.memory_space<vmem>>, %arg4: memref<8x128xf32, #tpu.memory_space<vmem>>, %arg5: memref<128x128xf32, #tpu.memory_space<vmem>>, %arg6: memref<8x1xf32, #tpu.memory_space<vmem>>, %arg7: memref<8x1xf32, #tpu.memory_space<vmem>>, %arg8: memref<8x1xf32, #tpu.memory_space<vmem>>, %arg9: memref<8x1xf32, #tpu.memory_space<vmem>>, %arg10: memref<8x1xf32, #tpu.memory_space<vmem>>) attributes {dimension_semantics = [#tpu.dimension_semantics<parallel>, #tpu.dimension_semantics<arbitrary>], iteration_bounds = array<i64: 2, 2>, scalar_prefetch = 0 : i64, scratch_operands = 4 : i64, tpu.core_type = #tpu.core_type<tc>, window_params = [{transform_indices = @transform_0, window_bounds = array<i64: 8, 1>}, {transform_indices = @transform_1, window_bounds = array<i64: 1, 128>}, {transform_indices = @transform_2, window_bounds = array<i64: 8, 128>}, {transform_indices = @transform_3, window_bounds = array<i64: 128, 128>}, {transform_indices = @transform_4, window_bounds = array<i64: 8, 1>}]} {
    %c0_i32 = arith.constant 0 : i32
    %0 = arith.cmpi eq, %arg1, %c0_i32 : i32
    %1 = arith.extui %0 : i1 to i32
    %c0_i32_0 = arith.constant 0 : i32
    %2 = arith.cmpi ne, %1, %c0_i32_0 : i32
    scf.if %2 {
      %cst_31 = arith.constant 0xFF800000 : f32
      %48 = vector.broadcast %cst_31 : f32 to vector<8x1xf32>
      %c0_32 = arith.constant 0 : index
      %c0_33 = arith.constant 0 : index
      %49 = vector.load %arg7[%c0_32, %c0_33] : memref<8x1xf32, #tpu.memory_space<vmem>>, vector<8x1xf32>
      tpu.vector_store %arg7[%c0_32, %c0_33], %48 {strides = array<i32>} : memref<8x1xf32, #tpu.memory_space<vmem>>, vector<8x1xf32>,
      %cst_34 = arith.constant 0.000000e+00 : f32
      %50 = vector.broadcast %cst_34 : f32 to vector<8x1xf32>
      %c0_35 = arith.constant 0 : index
      %c0_36 = arith.constant 0 : index
      %51 = vector.load %arg8[%c0_35, %c0_36] : memref<8x1xf32, #tpu.memory_space<vmem>>, vector<8x1xf32>
      tpu.vector_store %arg8[%c0_35, %c0_36], %50 {strides = array<i32>} : memref<8x1xf32, #tpu.memory_space<vmem>>, vector<8x1xf32>,
      %cst_37 = arith.constant 0.000000e+00 : f32
      %52 = vector.broadcast %cst_37 : f32 to vector<8x1xf32>
      %c0_38 = arith.constant 0 : index
      %c0_39 = arith.constant 0 : index
      %53 = vector.load %arg9[%c0_38, %c0_39] : memref<8x1xf32, #tpu.memory_space<vmem>>, vector<8x1xf32>
      tpu.vector_store %arg9[%c0_38, %c0_39], %52 {strides = array<i32>} : memref<8x1xf32, #tpu.memory_space<vmem>>, vector<8x1xf32>,
      %cst_40 = arith.constant 0.000000e+00 : f32
      %54 = vector.broadcast %cst_40 : f32 to vector<8x1xf32>
      %c0_41 = arith.constant 0 : index
      %c0_42 = arith.constant 0 : index
      %55 = vector.load %arg10[%c0_41, %c0_42] : memref<8x1xf32, #tpu.memory_space<vmem>>, vector<8x1xf32>
      tpu.vector_store %arg10[%c0_41, %c0_42], %54 {strides = array<i32>} : memref<8x1xf32, #tpu.memory_space<vmem>>, vector<8x1xf32>,
    } else {
    }
    %c0 = arith.constant 0 : index
    %c0_1 = arith.constant 0 : index
    %3 = vector.load %arg2[%c0, %c0_1] : memref<8x1xi32, #tpu.memory_space<vmem>>, vector<8x1xi32>
    %c0_2 = arith.constant 0 : index
    %c0_3 = arith.constant 0 : index
    %4 = vector.load %arg3[%c0_2, %c0_3] : memref<1x128xi32, #tpu.memory_space<vmem>>, vector<1x128xi32>
    %5 = vector.broadcast %3 : vector<8x1xi32> to vector<8x128xi32>
    %6 = vector.broadcast %4 : vector<1x128xi32> to vector<8x128xi32>
    %7 = arith.cmpi eq, %5, %6 : vector<8x128xi32>
    %8 = arith.extui %7 : vector<8x128xi1> to vector<8x128xi32>
    %9 = arith.sitofp %8 : vector<8x128xi32> to vector<8x128xf32>
    %c0_4 = arith.constant 0 : index
    %c0_5 = arith.constant 0 : index
    %10 = vector.load %arg4[%c0_4, %c0_5] : memref<8x128xf32, #tpu.memory_space<vmem>>, vector<8x128xf32>
    %c0_6 = arith.constant 0 : index
    %c0_7 = arith.constant 0 : index
    %11 = vector.load %arg5[%c0_6, %c0_7] : memref<128x128xf32, #tpu.memory_space<vmem>>, vector<128x128xf32>
    %cst = arith.constant dense<0.000000e+00> : vector<8x128xf32>
    %12 = tpu.matmul %10, %11, %cst {dimension_numbers = #tpu.dot_dimension_numbers<[1], [0], [0], [1], [0, 0, 1, 1], [], []>} : vector<8x128xf32>, vector<128x128xf32>, vector<8x128xf32> -> vector<8x128xf32>
    %cst_8 = arith.constant 2.000000e+01 : f32
    %13 = vector.broadcast %cst_8 : f32 to vector<8x128xf32>
    %14 = arith.mulf %12, %13 : vector<8x128xf32>
    %cst_9 = arith.constant 1.000000e-01 : f32
    %15 = vector.broadcast %cst_9 : f32 to vector<8x128xf32>
    %16 = arith.mulf %15, %9 : vector<8x128xf32>
    %17 = arith.subf %14, %16 : vector<8x128xf32>
    %cst_10 = arith.constant dense<0xFF800000> : vector<8xf32>
    %18 = vector.multi_reduction <maximumf>, %17, %cst_10 [1] : vector<8x128xf32> to vector<8xf32>
    %19 = vector.shape_cast %18 : vector<8xf32> to vector<8x1xf32>
    %c0_11 = arith.constant 0 : index
    %c0_12 = arith.constant 0 : index
    %20 = vector.load %arg7[%c0_11, %c0_12] : memref<8x1xf32, #tpu.memory_space<vmem>>, vector<8x1xf32>
    %21 = arith.maximumf %20, %19 : vector<8x1xf32>
    %22 = arith.subf %20, %21 : vector<8x1xf32>
    %23 = math.exp %22 : vector<8x1xf32>
    %c0_13 = arith.constant 0 : index
    %c0_14 = arith.constant 0 : index
    %24 = vector.load %arg8[%c0_13, %c0_14] : memref<8x1xf32, #tpu.memory_space<vmem>>, vector<8x1xf32>
    %25 = arith.mulf %23, %24 : vector<8x1xf32>
    %26 = vector.broadcast %21 : vector<8x1xf32> to vector<8x128xf32>
    %27 = arith.subf %17, %26 : vector<8x128xf32>
    %28 = math.exp %27 : vector<8x128xf32>
    %cst_15 = arith.constant dense<0.000000e+00> : vector<8xf32>
    %29 = vector.multi_reduction <add>, %28, %cst_15 [1] : vector<8x128xf32> to vector<8xf32>
    %30 = vector.shape_cast %29 : vector<8xf32> to vector<8x1xf32>
    %31 = arith.addf %25, %30 : vector<8x1xf32>
    %c0_16 = arith.constant 0 : index
    %c0_17 = arith.constant 0 : index
    %32 = vector.load %arg8[%c0_16, %c0_17] : memref<8x1xf32, #tpu.memory_space<vmem>>, vector<8x1xf32>
    tpu.vector_store %arg8[%c0_16, %c0_17], %31 {strides = array<i32>} : memref<8x1xf32, #tpu.memory_space<vmem>>, vector<8x1xf32>,
    %c0_18 = arith.constant 0 : index
    %c0_19 = arith.constant 0 : index
    %33 = vector.load %arg7[%c0_18, %c0_19] : memref<8x1xf32, #tpu.memory_space<vmem>>, vector<8x1xf32>
    tpu.vector_store %arg7[%c0_18, %c0_19], %21 {strides = array<i32>} : memref<8x1xf32, #tpu.memory_space<vmem>>, vector<8x1xf32>,
    %c0_20 = arith.constant 0 : index
    %c0_21 = arith.constant 0 : index
    %34 = vector.load %arg9[%c0_20, %c0_21] : memref<8x1xf32, #tpu.memory_space<vmem>>, vector<8x1xf32>
    %35 = arith.mulf %9, %17 : vector<8x128xf32>
    %cst_22 = arith.constant dense<0.000000e+00> : vector<8xf32>
    %36 = vector.multi_reduction <add>, %35, %cst_22 [1] : vector<8x128xf32> to vector<8xf32>
    %37 = vector.shape_cast %36 : vector<8xf32> to vector<8x1xf32>
    %38 = arith.addf %34, %37 : vector<8x1xf32>
    %c0_23 = arith.constant 0 : index
    %c0_24 = arith.constant 0 : index
    %39 = vector.load %arg9[%c0_23, %c0_24] : memref<8x1xf32, #tpu.memory_space<vmem>>, vector<8x1xf32>
    tpu.vector_store %arg9[%c0_23, %c0_24], %38 {strides = array<i32>} : memref<8x1xf32, #tpu.memory_space<vmem>>, vector<8x1xf32>,
    %c0_25 = arith.constant 0 : index
    %c0_26 = arith.constant 0 : index
    %40 = vector.load %arg10[%c0_25, %c0_26] : memref<8x1xf32, #tpu.memory_space<vmem>>, vector<8x1xf32>
    %cst_27 = arith.constant dense<0.000000e+00> : vector<8xf32>
    %41 = vector.multi_reduction <add>, %9, %cst_27 [1] : vector<8x128xf32> to vector<8xf32>
    %42 = vector.shape_cast %41 : vector<8xf32> to vector<8x1xf32>
    %43 = arith.addf %40, %42 : vector<8x1xf32>
    %c0_28 = arith.constant 0 : index
    %c0_29 = arith.constant 0 : index
    %44 = vector.load %arg10[%c0_28, %c0_29] : memref<8x1xf32, #tpu.memory_space<vmem>>, vector<8x1xf32>
    tpu.vector_store %arg10[%c0_28, %c0_29], %43 {strides = array<i32>} : memref<8x1xf32, #tpu.memory_space<vmem>>, vector<8x1xf32>,
    %c1_i32 = arith.constant 1 : i32
    %45 = arith.cmpi eq, %arg1, %c1_i32 : i32
    %46 = arith.extui %45 : i1 to i32
    %c0_i32_30 = arith.constant 0 : i32
    %47 = arith.cmpi ne, %46, %c0_i32_30 : i32
    scf.if %47 {
      %c0_31 = arith.constant 0 : index
      %c0_32 = arith.constant 0 : index
      %48 = vector.load %arg7[%c0_31, %c0_32] : memref<8x1xf32, #tpu.memory_space<vmem>>, vector<8x1xf32>
      %c0_33 = arith.constant 0 : index
      %c0_34 = arith.constant 0 : index
      %49 = vector.load %arg8[%c0_33, %c0_34] : memref<8x1xf32, #tpu.memory_space<vmem>>, vector<8x1xf32>
      %50 = math.log %49 : vector<8x1xf32>
      %51 = arith.addf %48, %50 : vector<8x1xf32>
      %c0_35 = arith.constant 0 : index
      %c0_36 = arith.constant 0 : index
      %52 = vector.load %arg10[%c0_35, %c0_36] : memref<8x1xf32, #tpu.memory_space<vmem>>, vector<8x1xf32>
      %cst_37 = arith.constant 1.000000e+00 : f32
      %53 = vector.broadcast %cst_37 : f32 to vector<8x1xf32>
      %54 = arith.maximumf %52, %53 : vector<8x1xf32>
      %c0_38 = arith.constant 0 : index
      %c0_39 = arith.constant 0 : index
      %55 = vector.load %arg9[%c0_38, %c0_39] : memref<8x1xf32, #tpu.memory_space<vmem>>, vector<8x1xf32>
      %56 = arith.divf %55, %54 : vector<8x1xf32>
      %57 = arith.subf %51, %56 : vector<8x1xf32>
      %c0_40 = arith.constant 0 : index
      %c0_41 = arith.constant 0 : index
      %58 = vector.load %arg6[%c0_40, %c0_41] : memref<8x1xf32, #tpu.memory_space<vmem>>, vector<8x1xf32>
      tpu.vector_store %arg6[%c0_40, %c0_41], %57 {strides = array<i32>} : memref<8x1xf32, #tpu.memory_space<vmem>>, vector<8x1xf32>,
    } else {
    }
    return
  }
  func.func @transform_0(%arg0: i32, %arg1: i32) -> (i32, i32) {
    %c0_i32 = arith.constant 0 : i32
    %c0_i32_0 = arith.constant 0 : i32
    return %arg0, %c0_i32 : i32, i32
  }
  func.func @transform_1(%arg0: i32, %arg1: i32) -> (i32, i32) {
    %c0_i32 = arith.constant 0 : i32
    %c0_i32_0 = arith.constant 0 : i32
    return %c0_i32, %arg1 : i32, i32
  }
  func.func @transform_2(%arg0: i32, %arg1: i32) -> (i32, i32) {
    %c0_i32 = arith.constant 0 : i32
    %c0_i32_0 = arith.constant 0 : i32
    return %arg0, %c0_i32 : i32, i32
  }
  func.func @transform_3(%arg0: i32, %arg1: i32) -> (i32, i32) {
    %c0_i32 = arith.constant 0 : i32
    %c0_i32_0 = arith.constant 0 : i32
    return %c0_i32, %arg1 : i32, i32
  }
  func.func @transform_4(%arg0: i32, %arg1: i32) -> (i32, i32) {
    %c0_i32 = arith.constant 0 : i32
    %c0_i32_0 = arith.constant 0 : i32
    return %arg0, %c0_i32 : i32, i32
  }
}

</mosaic_0001>

<bundles_post_ra>
// kernel: tpu_custom_call.1
= control target key start
LH: loop header
LB: loop body
LE: loop exit
PB: predicated region body
PF: predicated region fallthrough
CT: control target
= control target key end

     0   :  { %9 = vsyncpa [#allocation7], 0  ;;  %s1071_s0 = inlined_call_operand.vmem [shape: s32[16,1], index: 0, kind: input, shape index: {}]   ;;  %s1072_s1 = inlined_call_operand.vmem [shape: s32[1,256], index: 1, kind: input, shape index: {}]   ;;  %s1073_s2 = inlined_call_operand.vmem [shape: f32[16,128], index: 2, kind: input, shape index: {}]   ;;  %s1074_s3 = inlined_call_operand.hbm [shape: f32[128,256], index: 3, kind: input, shape index: {}]   ;;  %s1075_s4 = inlined_call_operand.vmem [shape: f32[16,1], index: 4, kind: output, shape index: {}]  }
   0x1   :  { %11 = vsyncpa [#allocation7 + $0x1], 0  ;;  %s861_s15 = smov 0   ;;  %s863_s16 = smov 0  }
   0x2   :  { %s865_s17 = smov 0   ;;  %s867_s18 = smov 0  }
   0x3   :  { %s869_s19 = smov 0   ;;  %s871_s20 = smov 0  }
   0x4   :  { %s873_s21 = smov 0   ;;  %s875_s22 = smov 0  }
   0x5 LB: > { %s545_s23 = sadd.s32 4294967295, %s824_s22   ;;  %s26_s24 = sadd.s32 1, %s816_s20  ;;  %s824_s22 = sphi %s875_s22, %s17_s22   ;;  %s820_s21 = sphi %s873_s21, %s1086_s21   ;;  %s816_s20 = sphi %s871_s20, %s1085_s20   ;;  %s812_s19 = sphi %s869_s19, %s1084_s19   ;;  %s808_s18 = sphi %s867_s18, %s1083_s18   ;;  %s804_s17 = sphi %s865_s17, %s1082_s17   ;;  %s800_s16 = sphi %s863_s16, %s1081_s16   ;;  %s796_s15 = sphi %s861_s15, %s1080_s15  }
   0x6   : > { %p27_p0 = scmp.ge.s32.totalorder %s26_s24, 2  ;;  %s29_s25 = sadd.s32 1, %s820_s21 }
   0x7   : > { %s114_s26 = sadd.s32 1, %s804_s17  ;;  %p121_p1 = scmp.ne.s32.totalorder %s804_s17, %s800_s16 }
   0x8   : > { %s1088_s24 = smov (%p27_p0, %s26_s24), 0  ;;  %s1090_s25 = smov (!%p27_p0, %s29_s25), %s820_s21 }
   0x9   : > { %s111_s27 = ssub.s32 %s816_s20, %s1088_s24  ;;  %p122_p2 = scmp.eq.s32.totalorder %s824_s22, 0 }
   0xa   : > { %p31_p3 = scmp.ge.s32.totalorder %s1090_s25, 2  ;;  %p112_p4 = scmp.eq.s32.totalorder %s111_s27, 0 }
   0xb   : > { %p911_p5 = por %p122_p2, %p121_p1  ;;  %p127_p6 = scmp.ne.s32.totalorder %s800_s16, %s796_s15 }
   0xc   : > { %s1092_s25 = smov (%p31_p3, %s1090_s25), 0  ;;  %p128_p7 = scmp.eq.s32.totalorder %s545_s23, 0 }
   0xd   : > { %s919_s29 = scalar_select %p112_p4, %s804_s17, %s114_s26  }
   0xe   : > { %p644_p8 = scmp.lt.s32.totalorder %s824_s22, 4  ;;  %s197_s30 = sand.u32 1, %s804_s17  }
   0xf   : > { %p923_p9 = por %p128_p7, %p127_p6  ;;  %s549_s6 = sshll.u32 %s197_s30, 7 }
  0x10   : > { %s550_s7 = sshll.u32 %s816_s20, 7  ;;  %s201_s11 = scalar_lea.vmem [#allocation6], %s549_s6 }
  0x11   : > { %s931_s10 = scalar_lea.hbm %s1074_s3, %s550_s7  ;;  %s207_s12 = sshll.u32 %s201_s11, 4  ;;  %s939_s12 = int_to_ptr.vmem [resolvable:$true] %s207_s12 }
  0x12   : > { %p935_p10 = pnand %p644_p8, %p911_p5  ;;  %s942_s14 = scalar_lea.sflag [#allocation7], %s197_s30 }
  0x13   : > { %s728_s15 = scalar_lea.hbm %s931_s10, 2048  ;;  %s733_s27 = scalar_lea.hbm %s1074_s3, 4096 }
  0x14   : > { %p729_p12 = scmp.ne.s32.totalorder %s931_s10, %s728_s15  ;;  %p730_p13 = pneg %p935_p10 }
  0x15   : > { %p734_p2 = scmp.lt.u32.totalorder %s931_s10, %s1074_s3  ;;  %p735_p3 = scmp.lt.u32.totalorder %s733_s27, %s728_s15 }
  0x16   : > { %p731_p0 = pnand %p730_p13, %p729_p12  ;;  %p737_p5 = scmp.lt.u32.totalorder %s728_s15, %s931_s10 }
  0x17   : > { %p736_p4 = por %p735_p3, %p734_p2 }
  0x18   : > { %p732_p1 = pneg %p731_p0 }
  0x19   : > { %p738_p6 = por %p737_p5, %p736_p4 }
  0x1b   : > { %p739_p7 = pnand %p738_p6, %p732_p1 }
  0x1d   : > { %742 = shalt.err (!%p739_p7)
}
  0x1e   : > { %s743_s30 = scalar_lea.vmem %s939_s12, 2048  ;;  %s826_s7 = smov [#allocation6]  }
  0x1f   : > { %p744_p8 = scmp.ne.s32.totalorder %s939_s12, %s743_s30  ;;  %s748_s8 = sshll.u32 %s826_s7, 4  ;;  %s749_s8 = int_to_ptr.vmem [resolvable:$false] %s748_s8 }
  0x20   : > { %s750_s9 = scalar_lea.vmem %s749_s8, 4096  ;;  %p751_p11 = scmp.lt.s32.totalorder %s939_s12, %s749_s8 }
  0x21   : > { %p746_p12 = pnand %p744_p8, %p730_p13  ;;  %p752_p2 = scmp.lt.s32.totalorder %s750_s9, %s743_s30 }
  0x23   : > { %p747_p0 = pneg %p746_p12  ;;  %p753_p3 = por %p752_p2, %p751_p11 }
  0x25   : > { %p754_p4 = pnand %p753_p3, %p747_p0 }
  0x27   : > { %757 = shalt.err (!%p754_p4)
}
  0x28   : > { %s827_s11 = smov 256   ;;  %s828_s15 = smov 128  }
  0x29   : > { %s829_s23 = smov 8   ;;  %p215_p13 = scmp.lt.s32.totalorder %s824_s22, 5 }
  0x2a   : > { %643 = dma.hbm_to_vmem [thread:$0]  (!%p935_p10), %s931_s10, 2048, %s939_s12, %s942_s14, %s827_s11, %s828_s15, %s829_s23  }
  0x2b   : > { %p1079_p1 = scmp.ge.s32.totalorder %s824_s22, 1 }
  0x2d   : > { %p216_p5 = pnand %p1079_p1, %p215_p13 }
  0x2e   : > { %s221_s26 = sand.u32 (!%p216_p5), 1, %s800_s16  }
  0x2f   : > { %219 = sbr.rel (%p216_p5) target bundleno = 773 (0x305), region = 36  ;;  %s552_s27 = sshll.u32 (!%p216_p5), %s221_s26, 7 }
  0x30   : > { %s222_s28 = scalar_lea.sflag (!%p216_p5), [#allocation7], %s221_s26  ;;  %s974_s6 = scalar_lea.vmem (!%p216_p5), [#allocation6], %s552_s27 }
  0x36   : > { %791 = dma.done.wait (%p923_p9), %s222_s28, 2048  }
  0x37   : > { %793 = vsyncadd (%p923_p9), %s222_s28, 4294965248  ;;  %p260_p10 = scmp.lt.s32.totalorder %s812_s19, 1  ;;  %p264_p11 = scmp.lt.s32.totalorder %s808_s18, 1 }
  0x38   : > { %p556_p9 = scmp.ne.s32.totalorder %s808_s18, 0 }
  0x39   : > { %s1094_s19 = smov (!%p260_p10, %s812_s19), 1  ;;  %vm279_vm0 = vcmask (!%p556_p9), 7168   ;;  %v830_v0 = vmov (!%p556_p9), -inf   ;;  %v831_v1 = vmov (!%p556_p9), 0.0  }
  0x3a   : > { %s984_s10 = scalar_select %p264_p11, %s808_s18, 1 }
  0x3b   : > { %s986_s12 = sshll.u32 %s1094_s19, 3  ;;  %278 = sbr.rel (%p556_p9) target bundleno = 66 (0x42), region = 44  ;;  %280 = vst.msk [vmem:[#allocation2] sm:$0xff] (!%p556_p9), %vm279_vm0, %v830_v0  ;;  %281 = vst.msk [vmem:[#allocation3] sm:$0xff] (!%p556_p9), %vm279_vm0, %v831_v1 }
  0x3c   : > { %s263_s5 = scalar_lea.vmem %s1071_s0, %s986_s12  ;;  %s266_s8 = scalar_lea.vmem %s1072_s1, %s984_s10  ;;  %282 = vst.msk [vmem:[#allocation4] sm:$0xff] (!%p556_p9), %vm279_vm0, %v831_v1  ;;  %283 = vst.msk [vmem:[#allocation5] sm:$0xff] (!%p556_p9), %vm279_vm0, %v831_v1 }
  0x3d   : > { %s270_s15 = scalar_lea.vmem %s1073_s2, %s986_s12  ;;  %s274_s19 = scalar_lea.vmem %s1075_s4, %s986_s12 }
  0x42 PF: > { %v297_v2 = vld [vmem:[%s974_s6] sm:$0xff]  ;;  %v298_v3 = vld [vmem:[%s974_s6 + $0x8] sm:$0xff]  ;;  %v299_v4 = vld [vmem:[%s974_s6 + $0x10] sm:$0xff]  ;;  %v832_v5 = vmov 0.0|0.0   ;;  %vm833_vm1 = vmmov 0   ;;  %v834_v8 = vmov 0.0  }
  0x43   : > { %614 = vmatprep.subr.bf16.mxu0 %v832_v5  ;;  %v615_v6 = vpack.c.bf16 %v298_v3, %v297_v2  ;;  %v300_v7 = vld [vmem:[%s974_s6 + $0x18] sm:$0xff]  ;;  %611 = vmatprep.mubr.msk.f32.mxu0 %vm833_vm1, %v834_v8  ;;  %v835_v9 = vmov 0   ;;  %v301_v11 = vld [vmem:[%s974_s6 + $0x20] sm:$0xff]  ;;  %v302_v12 = vld [vmem:[%s974_s6 + $0x28] sm:$0xff]  ;;  %vm406_vm3 = vcmask 7168   ;;  %p559_p6 = scmp.ne.s32.totalorder %s808_s18, 1 }
  0x44   : > { %718 = vset.pattern.permute.xlu0 %v835_v9  ;;  %719 = vset.pattern.permute.xlu1 %v835_v9  ;;  %v618_v10 = vpack.c.bf16 %v300_v7, %v299_v4  ;;  %v284_v13 = vld [vmem:[%s263_s5] sm:$0xff]  ;;  %v621_v14 = vpack.c.bf16 %v302_v12, %v301_v11  ;;  %v304_v16 = vld [vmem:[%s974_s6 + $0x38] sm:$0xff]  ;;  %v305_v18 = vld [vmem:[%s974_s6 + $0x40] sm:$0xff] }
  0x45   : > { %616 = vmatpush3.bf16.msra.mxu0 %v615_v6  ;;  %287 = vperm.xlu0 %718, %v284_v13   ;;  %v303_v15 = vld [vmem:[%s974_s6 + $0x30] sm:$0xff]  ;;  %v306_v19 = vld [vmem:[%s974_s6 + $0x48] sm:$0xff]  ;;  %v308_v22 = vld [vmem:[%s974_s6 + $0x58] sm:$0xff] }
  0x46   : > { %617 = vmatprep.subr.bf16.mxu0 %v832_v5  ;;  %v624_v17 = vpack.c.bf16 %v304_v16, %v303_v15  ;;  %v627_v20 = vpack.c.bf16 %v306_v19, %v305_v18  ;;  %v307_v21 = vld [vmem:[%s974_s6 + $0x50] sm:$0xff]  ;;  %v309_v24 = vld [vmem:[%s974_s6 + $0x60] sm:$0xff]  ;;  %v310_v25 = vld [vmem:[%s974_s6 + $0x68] sm:$0xff] }
  0x47   : > { %v630_v23 = vpack.c.bf16 %v308_v22, %v307_v21  ;;  %v633_v26 = vpack.c.bf16 %v310_v25, %v309_v24  ;;  %v311_v27 = vld [vmem:[%s974_s6 + $0x70] sm:$0xff]  ;;  %v312_v28 = vld [vmem:[%s974_s6 + $0x78] sm:$0xff]  ;;  %v388_v40 = vld [vmem:[#allocation2] sm:$0xff] }
  0x48   : > { %v636_v29 = vpack.c.bf16 %v312_v28, %v311_v27  ;;  %v296_v30 = vld [vmem:[%s270_s15] sm:$0xff]  ;;  %v415_v47 = vld [vmem:[#allocation5] sm:$0xff]  ;;  %v393_v56 = vld [vmem:[#allocation3] sm:$0xff] }
  0x49   : > { %619 = vmatpush3.bf16.msra.mxu0 %v618_v10  ;;  %v557_v31 = vld [vmem:[%s266_s8] ss:$0 sm:$0xff] }
  0x4a   : > { %620 = vmatprep.subr.bf16.mxu0 %v832_v5  ;;  %v409_v43 = vld [vmem:[#allocation4] sm:$0xff] }
  0x4d   : > { %622 = vmatpush3.bf16.msra.mxu0 %v621_v14 }
  0x4e   : > { %623 = vmatprep.subr.bf16.mxu0 %v832_v5 }
  0x51   : > { %625 = vmatpush3.bf16.msra.mxu0 %v624_v17 }
  0x52   : > { %626 = vmatprep.subr.bf16.mxu0 %v832_v5 }
  0x55   : > { %628 = vmatpush3.bf16.msra.mxu0 %v627_v20 }
  0x56   : > { %629 = vmatprep.subr.bf16.mxu0 %v832_v5 }
  0x59   : > { %631 = vmatpush3.bf16.msra.mxu0 %v630_v23 }
  0x5a   : > { %632 = vmatprep.subr.bf16.mxu0 %v832_v5 }
  0x5d   : > { %634 = vmatpush3.bf16.msra.mxu0 %v633_v26 }
  0x5e   : > { %635 = vmatprep.subr.bf16.mxu0 %v832_v5 }
  0x61   : > { %637 = vmatpush3.bf16.msra.mxu0 %v636_v29 }
  0x64   : > { %612 = vmatmul.mubr.f32.vlgmr.msra.gmra.mrb[0].mxu0 %v296_v30 }
  0xc4   : > { %v288_v32 = vpop.permute.xlu0 %287 }
  0xc5   : > { %vm293_vm2 = vcmp.eq.s32.totalorder %v288_v32, %v557_v31 }
  0xc6   : > { %v558_v33 = vsel %vm293_vm2, 1.0, %v834_v8 }
  0xc7   : > { %v384_v34 = vmul.f32 0.1, %v558_v33 }
 0x137   : > { %v379_v35 = vpop.f32.mrb[0].mxu0 }
 0x138   : > { %v383_v36 = vmul.f32 20.0, %v379_v35  ;;  %v613_v37 = vpop.f32.mrb[1].mxu0 }
 0x13a   : > { %v385_v38 = vsub.f32 %v383_v36, %v384_v34 }
 0x13c   : > { %386 = vmax.xlane.f32.xlu0 %v385_v38  ;;  %v410_v39 = vmul.f32 %v558_v33, %v385_v38 }
 0x140   : > { %411 = vadd.xlane.f32.xlu0 %v410_v39 }
 0x144   : > { %416 = vadd.xlane.f32.xlu0 %v558_v33 }
 0x1c9   : > { %v387_v41 = vpop.xlane.xlu0 %386 }
 0x1ca   : > { %v389_v42 = vmax.f32 %v388_v40, %v387_v41 }
 0x1cc   : > { %v390_v44 = vsub.f32 %v388_v40, %v389_v42  ;;  %408 = vst.msk [vmem:[#allocation2] sm:$0xff] %vm406_vm3, %v389_v42  ;;  %397 = vperm.xlu1 %719, %v389_v42  }
 0x1cd   : > { %v412_v45 = vpop.xlane.xlu0 %411 }
 0x1ce   : > { %v413_v46 = vadd.f32 %v412_v45, %v409_v43  ;;  %v391_v54 = vmul.f32 1.442695, %v390_v44 }
 0x1d0   : > { %414 = vst.msk [vmem:[#allocation4] sm:$0xff] %vm406_vm3, %v413_v46 }
 0x1d1   : > { %v417_v48 = vpop.xlane.xlu0 %416 }
 0x1d2   : > { %v418_v49 = vadd.f32 %v417_v48, %v415_v47 }
 0x1d3   : > { %v424_v0 = vld [vmem:[#allocation2] sm:$0xff] (!%p559_p6) }
 0x1d4   : > { %419 = vst.msk [vmem:[#allocation5] sm:$0xff] %vm406_vm3, %v418_v49 }
 0x1d7   : > { %v431_v1 = vld [vmem:[#allocation4] sm:$0xff] (!%p559_p6) }
 0x1db   : > { %v429_v61 = vld [vmem:[#allocation5] sm:$0xff] (!%p559_p6) }
 0x1dc   : > { %v430_v62 = vmax.f32 (!%p559_p6), %v429_v61, 1.0 }
 0x24b   : > { %v398_v50 = vpop.permute.xlu1 %397 }
 0x24c   : > { %v400_v51 = vsub.f32 %v385_v38, %v398_v50 }
 0x24e   : > { %v401_v52 = vmul.f32 1.442695, %v400_v51 }
 0x250   : > { %720 = vpow2.f32 %v401_v52 }
 0x251   : > { %722 = vpow2.f32 %v391_v54 }
 0x25a   : > { %v721_v53 = vpop.eup %720 }
 0x25b   : > { %403 = vadd.xlane.f32.xlu1 %v721_v53  ;;  %v723_v55 = vpop.eup %722 }
 0x25c   : > { %v394_v57 = vmul.f32 %v723_v55, %v393_v56 }
 0x2e5   : > { %423 = sbr.rel (%p559_p6) target bundleno = 773 (0x305), region = 48 }
 0x2e8   : > { %v404_v58 = vpop.xlane.xlu1 %403 }
 0x2e9   : > { %v405_v59 = vadd.f32 %v404_v58, %v394_v57 }
 0x2eb   : > { %407 = vst.msk [vmem:[#allocation3] sm:$0xff] %vm406_vm3, %v405_v59 }
 0x2f2   : > { %v425_v60 = vld [vmem:[#allocation3] sm:$0xff] }
 0x2f3   : > { %724 = vlog2.f32 %v425_v60 }
 0x2f4   : > { %726 = vrcp.f32 %v430_v62 }
 0x2fd   : > { %v725_v63 = vpop.eup %724 }
 0x2fe   : > { %v427_v2 = vmul.f32 0.6931472, %v725_v63  ;;  %v727_v3 = vpop.eup %726 }
 0x2ff   : > { %v433_v5 = vmul.f32 %v727_v3, %v431_v1 }
 0x300   : > { %v428_v4 = vadd.f32 %v427_v2, %v424_v0 }
 0x302   : > { %v434_v6 = vsub.f32 %v428_v4, %v433_v5 }
 0x304   : > { %435 = vst.msk [vmem:[%s274_s19] sm:$0xff] %vm406_vm3, %v434_v6 }
 0x305 PF: > { %s17_s22 = sadd.s32 1, %s824_s22   ;;  %s1080_s15 = smov %s800_s16 }
 0x306   : > { %p14_p7 = scmp.ge.s32.totalorder %s17_s22, 6   ;;  %s1081_s16 = smov %s804_s17 }
 0x307   : > { %s1082_s17 = smov %s919_s29  ;;  %s1083_s18 = smov %s816_s20 }
 0x308   : > { %s1084_s19 = smov %s820_s21  ;;  %s1085_s20 = smov %s1088_s24 }
 0x309   : > { %s1086_s21 = smov %s1092_s25  ;;  %16 = sbr.rel (!%p14_p7) target bundleno = 5 (0x5), region = 93 }
 0x310   :  { %455 = vsyncpa [#allocation7], 1 }
 0x311   :  { %457 = vsyncpa [#allocation7 + $0x1], 1 }

</bundles_post_ra>
